<compile_context>
chip_gen: v5e
topology: v5e:2x2
jax: 0.10.0
libtpu: 0.0.40
codegen_flags: <defaults>
</compile_context>

<pallas_src>
import jax
import jax.numpy as jnp
from jax.experimental import pallas as pl
from jax.experimental.pallas import tpu as pltpu

EPS = 1e-5


def _banded_conv_weight(w_hwio, W):
    """(3,3,C,C) HWIO -> (3, W*C, W*C) bf16.

    For each kh, a banded block that folds the three kw taps, the W-direction
    shifts and the zero padding into the contraction dimension of z @ Wb[kh].
    """
    C = w_hwio.shape[-1]
    blocks = []
    for kh in range(3):
        m = jnp.zeros((W * C, W * C), jnp.float32)
        for kw in range(3):
            m = m + jnp.kron(jnp.eye(W, k=1 - kw, dtype=jnp.float32),
                             w_hwio[kh, kw].astype(jnp.float32))
        blocks.append(m)
    return jnp.stack(blocks, axis=0).astype(jnp.bfloat16)


def residual_block(x_nhwc, w1, w2, g1, b1, g2, b2):
    N, H, W, C = x_nhwc.shape
    NH, WC = N * H, W * C
    x_p = x_nhwc.reshape(NH, WC).astype(jnp.float32)         # lane-dense pack

    wb1 = _banded_conv_weight(w1, W)                          # (3, WC, WC) bf16
    wb2 = _banded_conv_weight(w2, W)
    g1_l = jnp.tile(g1.reshape(1, C).astype(jnp.float32), (1, W))
    b1_l = jnp.tile(b1.reshape(1, C).astype(jnp.float32), (1, W))
    g2_l = jnp.tile(g2.reshape(1, C).astype(jnp.float32), (1, W))
    b2_l = jnp.tile(b2.reshape(1, C).astype(jnp.float32), (1, W))

    inv_count = 1.0 / float(N * H * W)

    def kernel(x_ref, wb1_ref, wb2_ref, g1_ref, b1_ref, g2_ref, b2_ref,
               out_ref):
        x = x_ref[...]                                        # (NH, WC) f32

        # Image-boundary masks for the H-direction shifts (row h-1 / h+1).
        row = jax.lax.broadcasted_iota(jnp.int32, (NH, WC), 0)
        keep_up = (row % H) != 0            # row h-1 exists
        keep_dn = (row % H) != (H - 1)      # row h+1 exists

        def spread_channel_sum(s):
            # s: (2, WC), lane l = w*C + c.  Cyclic roll-and-add across the W
            # replicas so every lane holds the per-channel total (XLU + VPU).
            if W & (W - 1) == 0:            # power-of-two W: log2(W) steps
                shift = C
                while shift < WC:
                    s = s + pltpu.roll(s, shift, axis=1)
                    shift *= 2
            else:                           # generic fallback: W-1 rolls
                acc = s
                for k in range(1, W):
                    acc = acc + pltpu.roll(s, k * C, axis=1)
                s = acc
            return s

        def conv3x3(z, wb_ref):
            # Row shifts via XLU roll + boundary mask; one bf16 MXU matmul per
            # kh tap row, f32 accumulation (taps/W-shifts/padding live in wb).
            z_up = jnp.where(keep_up, pltpu.roll(z, 1, axis=0), 0.0)
            z_dn = jnp.where(keep_dn, pltpu.roll(z, NH - 1, axis=0), 0.0)
            acc = jnp.dot(z_up.astype(jnp.bfloat16), wb_ref[0],
                          preferred_element_type=jnp.float32)
            acc = acc + jnp.dot(z.astype(jnp.bfloat16), wb_ref[1],
                                preferred_element_type=jnp.float32)
            acc = acc + jnp.dot(z_dn.astype(jnp.bfloat16), wb_ref[2],
                                preferred_element_type=jnp.float32)
            return acc                                        # (NH, WC) f32

        def batchnorm(y, g_ref, b_ref):
            # Single-pass batch stats, all in f32.
            # TODO(synk): switch to a two-pass / Welford variant if activation
            # magnitudes grow and E[y^2]-E[y]^2 cancellation becomes an issue.
            s1 = jnp.sum(y, axis=0, keepdims=True)            # (1, WC)
            s2 = jnp.sum(y * y, axis=0, keepdims=True)        # (1, WC)
            s = spread_channel_sum(jnp.concatenate([s1, s2], axis=0))
            mu = s[0:1, :] * inv_count
            ex2 = s[1:2, :] * inv_count
            var = ex2 - mu * mu
            inv = jax.lax.rsqrt(var + EPS)
            return (y - mu) * (inv * g_ref[...]) + b_ref[...]

        # conv1 -> bn1 -> relu
        y1 = jnp.maximum(batchnorm(conv3x3(x, wb1_ref), g1_ref, b1_ref), 0.0)
        # conv2 -> bn2 -> + residual -> relu
        y2 = batchnorm(conv3x3(y1, wb2_ref), g2_ref, b2_ref)
        out_ref[...] = jnp.maximum(y2 + x, 0.0)

    def full_spec(shape):
        nd = len(shape)
        return pl.BlockSpec(shape, lambda i, _nd=nd: (0,) * _nd)

    args = (x_p, wb1, wb2, g1_l, b1_l, g2_l, b2_l)
    flops = 2 * (2 * NH * WC * (3 * WC))                      # two 3x3 convs
    bytes_accessed = int(sum(int(a.size) * a.dtype.itemsize for a in args)
                         + NH * WC * 4)
    out_p = pl.pallas_call(
        kernel,
        out_shape=jax.ShapeDtypeStruct((NH, WC), jnp.float32),
        grid=(1,),
        in_specs=[full_spec(a.shape) for a in args],
        out_specs=full_spec((NH, WC)),
        compiler_params=pltpu.CompilerParams(
            dimension_semantics=("arbitrary",)),
        cost_estimate=pl.CostEstimate(flops=flops,
                                      transcendentals=4 * WC,
                                      bytes_accessed=bytes_accessed),
        # TODO(synk): for large N*H, tile rows over a "parallel" grid (2 TCs on
        # v7x) with a two-pass BN (stats pass + normalize pass) and size the
        # row tile against v7x's 64 MiB VMEM / 32 MiB scoped default.
    )(*args)
    return out_p.reshape(N, H, W, C)


def _conv_ref(z, w, dtype):
    return jax.lax.conv_general_dilated(
        z.astype(dtype), w.astype(dtype),
        window_strides=(1, 1), padding="SAME",
        dimension_numbers=("NHWC", "HWIO", "NHWC"),
        preferred_element_type=jnp.float32)


def _bn_ref(y, g, b):
    mu = jnp.mean(y, axis=(0, 1, 2), keepdims=True)
    var = jnp.mean((y - mu) ** 2, axis=(0, 1, 2), keepdims=True)
    return ((y - mu) * jax.lax.rsqrt(var + EPS) * g.reshape(1, 1, 1, -1)
            + b.reshape(1, 1, 1, -1))


def residual_block_ref(x, w1, w2, g1, b1, g2, b2, conv_dtype=jnp.float32):
    """Pure-JAX reference (NHWC) matching the PyTorch forward (training BN).

    conv_dtype=jnp.bfloat16 mirrors the kernel's mixed-precision MXU path
    (bf16 operands, f32 accumulation) for a tight numerical comparison.
    """
    y = jnp.maximum(_bn_ref(_conv_ref(x, w1, conv_dtype), g1, b1), 0.0)
    y = _bn_ref(_conv_ref(y, w2, conv_dtype), g2, b2)
    return jnp.maximum(y + x, 0.0)


if __name__ == "__main__":
    # batch=2, in_ch=8, 16x16 spatial -> packed lane dim W*C = 128 (lane-dense)
    N, C, H, W = 2, 8, 16, 16
    key = jax.random.PRNGKey(0)
    kx, kw1, kw2 = jax.random.split(key, 3)

    x_nchw = jax.random.normal(kx, (N, C, H, W), jnp.float32)   # PyTorch layout
    x_nhwc = jnp.transpose(x_nchw, (0, 2, 3, 1))                # kernel layout

    w1 = jax.random.normal(kw1, (3, 3, C, C), jnp.float32) * 0.1   # conv1 HWIO
    w2 = jax.random.normal(kw2, (3, 3, C, C), jnp.float32) * 0.1   # conv2 HWIO
    g1 = jnp.ones((C,), jnp.float32)     # bn1.weight
    b1 = jnp.zeros((C,), jnp.float32)    # bn1.bias
    g2 = jnp.ones((C,), jnp.float32)     # bn2.weight
    b2 = jnp.zeros((C,), jnp.float32)    # bn2.bias

    out = residual_block(x_nhwc, w1, w2, g1, b1, g2, b2)
    out = jax.block_until_ready(out)

    # Tight check vs. a reference with the same mixed precision (bf16 MXU
    # operands, f32 accumulate) -> validates kernel structure / BN semantics.
    ref_mixed = residual_block_ref(x_nhwc, w1, w2, g1, b1, g2, b2,
                                   conv_dtype=jnp.bfloat16)
    err_mixed = float(jnp.max(jnp.abs(out - ref_mixed)))
    if err_mixed > 2e-3:
        raise AssertionError(f"mismatch vs mixed-precision ref: {err_mixed}")

    # Sanity check vs. the full-f32 reference (looser bound: bf16 operand
    # rounding in the convs is the only extra error source).
    ref_f32 = residual_block_ref(x_nhwc, w1, w2, g1, b1, g2, b2,
                                 conv_dtype=jnp.float32)
    err_f32 = float(jnp.max(jnp.abs(out - ref_f32)))
    if err_f32 > 5e-2:
        raise AssertionError(f"mismatch vs f32 ref: {err_f32}")

    print("KERNEL_OK")
</pallas_src>

<mosaic_0001>
module attributes {stable_mosaic.version = 11 : i64} {
  func.func @kernel(%arg0: i32, %arg1: memref<32x128xf32, #tpu.memory_space<vmem>>, %arg2: memref<3x128x128xbf16, #tpu.memory_space<vmem>>, %arg3: memref<3x128x128xbf16, #tpu.memory_space<vmem>>, %arg4: memref<1x128xf32, #tpu.memory_space<vmem>>, %arg5: memref<1x128xf32, #tpu.memory_space<vmem>>, %arg6: memref<1x128xf32, #tpu.memory_space<vmem>>, %arg7: memref<1x128xf32, #tpu.memory_space<vmem>>, %arg8: memref<32x128xf32, #tpu.memory_space<vmem>>) attributes {dimension_semantics = [#tpu.dimension_semantics<arbitrary>], iteration_bounds = array<i64: 1>, scalar_prefetch = 0 : i64, scratch_operands = 0 : i64, tpu.core_type = #tpu.core_type<tc>, window_params = [{pipeline_mode = #tpu.pipeline_mode<synchronous>, transform_indices = @transform_0, window_bounds = array<i64: 32, 128>}, {pipeline_mode = #tpu.pipeline_mode<synchronous>, transform_indices = @transform_1, window_bounds = array<i64: 3, 128, 128>}, {pipeline_mode = #tpu.pipeline_mode<synchronous>, transform_indices = @transform_2, window_bounds = array<i64: 3, 128, 128>}, {pipeline_mode = #tpu.pipeline_mode<synchronous>, transform_indices = @transform_3, window_bounds = array<i64: 1, 128>}, {pipeline_mode = #tpu.pipeline_mode<synchronous>, transform_indices = @transform_4, window_bounds = array<i64: 1, 128>}, {pipeline_mode = #tpu.pipeline_mode<synchronous>, transform_indices = @transform_5, window_bounds = array<i64: 1, 128>}, {pipeline_mode = #tpu.pipeline_mode<synchronous>, transform_indices = @transform_6, window_bounds = array<i64: 1, 128>}, {pipeline_mode = #tpu.pipeline_mode<synchronous>, transform_indices = @transform_7, window_bounds = array<i64: 32, 128>}]} {
    %c0 = arith.constant 0 : index
    %c0_0 = arith.constant 0 : index
    %0 = vector.load %arg1[%c0, %c0_0] : memref<32x128xf32, #tpu.memory_space<vmem>>, vector<32x128xf32>
    %1 = tpu.iota {dimensions = array<i32: 0>} : vector<32x128xi32>
    %c16_i32 = arith.constant 16 : i32
    %c0_i32 = arith.constant 0 : i32
    %2 = arith.cmpi eq, %c16_i32, %c0_i32 : i32
    %c1_i32 = arith.constant 1 : i32
    %3 = arith.select %2, %c1_i32, %c16_i32 : i32
    %4 = vector.broadcast %3 : i32 to vector<32x128xi32>
    %5 = arith.remsi %1, %4 : vector<32x128xi32>
    %c0_i32_1 = arith.constant 0 : i32
    %6 = vector.broadcast %c0_i32_1 : i32 to vector<32x128xi32>
    %7 = arith.cmpi ne, %5, %6 : vector<32x128xi32>
    %c0_i32_2 = arith.constant 0 : i32
    %8 = vector.broadcast %c0_i32_2 : i32 to vector<32x128xi32>
    %9 = arith.cmpi slt, %5, %8 : vector<32x128xi32>
    %c0_i32_3 = arith.constant 0 : i32
    %10 = arith.cmpi slt, %3, %c0_i32_3 : i32
    %11 = vector.broadcast %10 : i1 to vector<32x128xi1>
    %12 = vector.broadcast %11 : vector<32x128xi1> to vector<32x128xi1>
    %13 = arith.xori %9, %12 : vector<32x128xi1>
    %14 = arith.andi %13, %7 : vector<32x128xi1>
    %15 = vector.broadcast %3 : i32 to vector<32x128xi32>
    %16 = arith.addi %5, %15 : vector<32x128xi32>
    %17 = arith.select %14, %16, %5 : vector<32x128xi1>, vector<32x128xi32>
    %c0_i32_4 = arith.constant 0 : i32
    %18 = vector.broadcast %c0_i32_4 : i32 to vector<32x128xi32>
    %19 = arith.cmpi ne, %17, %18 : vector<32x128xi32>
    %c16_i32_5 = arith.constant 16 : i32
    %c0_i32_6 = arith.constant 0 : i32
    %20 = arith.cmpi eq, %c16_i32_5, %c0_i32_6 : i32
    %c1_i32_7 = arith.constant 1 : i32
    %21 = arith.select %20, %c1_i32_7, %c16_i32_5 : i32
    %22 = vector.broadcast %21 : i32 to vector<32x128xi32>
    %23 = arith.remsi %1, %22 : vector<32x128xi32>
    %c0_i32_8 = arith.constant 0 : i32
    %24 = vector.broadcast %c0_i32_8 : i32 to vector<32x128xi32>
    %25 = arith.cmpi ne, %23, %24 : vector<32x128xi32>
    %c0_i32_9 = arith.constant 0 : i32
    %26 = vector.broadcast %c0_i32_9 : i32 to vector<32x128xi32>
    %27 = arith.cmpi slt, %23, %26 : vector<32x128xi32>
    %c0_i32_10 = arith.constant 0 : i32
    %28 = arith.cmpi slt, %21, %c0_i32_10 : i32
    %29 = vector.broadcast %28 : i1 to vector<32x128xi1>
    %30 = vector.broadcast %29 : vector<32x128xi1> to vector<32x128xi1>
    %31 = arith.xori %27, %30 : vector<32x128xi1>
    %32 = arith.andi %31, %25 : vector<32x128xi1>
    %33 = vector.broadcast %21 : i32 to vector<32x128xi32>
    %34 = arith.addi %23, %33 : vector<32x128xi32>
    %35 = arith.select %32, %34, %23 : vector<32x128xi1>, vector<32x128xi32>
    %c15_i32 = arith.constant 15 : i32
    %36 = vector.broadcast %c15_i32 : i32 to vector<32x128xi32>
    %37 = arith.cmpi ne, %35, %36 : vector<32x128xi32>
    %c1_i32_11 = arith.constant 1 : i32
    %38 = tpu.dynamic_rotate %0 by %c1_i32_11 dim 0 : vector<32x128xf32>, i32 -> vector<32x128xf32>
    %cst = arith.constant 0.000000e+00 : f32
    %39 = vector.broadcast %cst : f32 to vector<32x128xf32>
    %40 = arith.select %19, %38, %39 : vector<32x128xi1>, vector<32x128xf32>
    %c31_i32 = arith.constant 31 : i32
    %41 = tpu.dynamic_rotate %0 by %c31_i32 dim 0 : vector<32x128xf32>, i32 -> vector<32x128xf32>
    %cst_12 = arith.constant 0.000000e+00 : f32
    %42 = vector.broadcast %cst_12 : f32 to vector<32x128xf32>
    %43 = arith.select %37, %41, %42 : vector<32x128xi1>, vector<32x128xf32>
    %44 = arith.truncf %40 : vector<32x128xf32> to vector<32x128xbf16>
    %c0_13 = arith.constant 0 : index
    %c0_14 = arith.constant 0 : index
    %c0_15 = arith.constant 0 : index
    %45 = vector.load %arg2[%c0_13, %c0_14, %c0_15] : memref<3x128x128xbf16, #tpu.memory_space<vmem>>, vector<1x128x128xbf16>
    %46 = vector.shape_cast %45 : vector<1x128x128xbf16> to vector<128x128xbf16>
    %cst_16 = arith.constant dense<0.000000e+00> : vector<32x128xf32>
    %47 = tpu.matmul %44, %46, %cst_16 {dimension_numbers = #tpu.dot_dimension_numbers<[1], [0], [0], [1], [0, 0, 1, 1], [], []>} : vector<32x128xbf16>, vector<128x128xbf16>, vector<32x128xf32> -> vector<32x128xf32>
    %48 = arith.truncf %0 : vector<32x128xf32> to vector<32x128xbf16>
    %c1 = arith.constant 1 : index
    %c0_17 = arith.constant 0 : index
    %c0_18 = arith.constant 0 : index
    %49 = vector.load %arg2[%c1, %c0_17, %c0_18] : memref<3x128x128xbf16, #tpu.memory_space<vmem>>, vector<1x128x128xbf16>
    %50 = vector.shape_cast %49 : vector<1x128x128xbf16> to vector<128x128xbf16>
    %cst_19 = arith.constant dense<0.000000e+00> : vector<32x128xf32>
    %51 = tpu.matmul %48, %50, %cst_19 {dimension_numbers = #tpu.dot_dimension_numbers<[1], [0], [0], [1], [0, 0, 1, 1], [], []>} : vector<32x128xbf16>, vector<128x128xbf16>, vector<32x128xf32> -> vector<32x128xf32>
    %52 = arith.addf %47, %51 : vector<32x128xf32>
    %53 = arith.truncf %43 : vector<32x128xf32> to vector<32x128xbf16>
    %c2 = arith.constant 2 : index
    %c0_20 = arith.constant 0 : index
    %c0_21 = arith.constant 0 : index
    %54 = vector.load %arg2[%c2, %c0_20, %c0_21] : memref<3x128x128xbf16, #tpu.memory_space<vmem>>, vector<1x128x128xbf16>
    %55 = vector.shape_cast %54 : vector<1x128x128xbf16> to vector<128x128xbf16>
    %cst_22 = arith.constant dense<0.000000e+00> : vector<32x128xf32>
    %56 = tpu.matmul %53, %55, %cst_22 {dimension_numbers = #tpu.dot_dimension_numbers<[1], [0], [0], [1], [0, 0, 1, 1], [], []>} : vector<32x128xbf16>, vector<128x128xbf16>, vector<32x128xf32> -> vector<32x128xf32>
    %57 = arith.addf %52, %56 : vector<32x128xf32>
    %cst_23 = arith.constant dense<0.000000e+00> : vector<128xf32>
    %58 = vector.multi_reduction <add>, %57, %cst_23 [0] : vector<32x128xf32> to vector<128xf32>
    %59 = vector.shape_cast %58 : vector<128xf32> to vector<1x128xf32>
    %60 = arith.mulf %57, %57 : vector<32x128xf32>
    %cst_24 = arith.constant dense<0.000000e+00> : vector<128xf32>
    %61 = vector.multi_reduction <add>, %60, %cst_24 [0] : vector<32x128xf32> to vector<128xf32>
    %62 = vector.shape_cast %61 : vector<128xf32> to vector<1x128xf32>
    %63 = tpu.concatenate %59, %62 in 0 : vector<1x128xf32>, vector<1x128xf32> -> vector<2x128xf32>
    %c8_i32 = arith.constant 8 : i32
    %64 = tpu.dynamic_rotate %63 by %c8_i32 dim 1 : vector<2x128xf32>, i32 -> vector<2x128xf32>
    %65 = arith.addf %63, %64 : vector<2x128xf32>
    %c16_i32_25 = arith.constant 16 : i32
    %66 = tpu.dynamic_rotate %65 by %c16_i32_25 dim 1 : vector<2x128xf32>, i32 -> vector<2x128xf32>
    %67 = arith.addf %65, %66 : vector<2x128xf32>
    %c32_i32 = arith.constant 32 : i32
    %68 = tpu.dynamic_rotate %67 by %c32_i32 dim 1 : vector<2x128xf32>, i32 -> vector<2x128xf32>
    %69 = arith.addf %67, %68 : vector<2x128xf32>
    %c64_i32 = arith.constant 64 : i32
    %70 = tpu.dynamic_rotate %69 by %c64_i32 dim 1 : vector<2x128xf32>, i32 -> vector<2x128xf32>
    %71 = arith.addf %69, %70 : vector<2x128xf32>
    %72 = vector.extract_strided_slice %71 {offsets = [0, 0], sizes = [1, 128], strides = [1, 1]} : vector<2x128xf32> to vector<1x128xf32>
    %cst_26 = arith.constant 0.001953125 : f32
    %73 = vector.broadcast %cst_26 : f32 to vector<1x128xf32>
    %74 = arith.mulf %72, %73 : vector<1x128xf32>
    %75 = vector.extract_strided_slice %71 {offsets = [1, 0], sizes = [1, 128], strides = [1, 1]} : vector<2x128xf32> to vector<1x128xf32>
    %cst_27 = arith.constant 0.001953125 : f32
    %76 = vector.broadcast %cst_27 : f32 to vector<1x128xf32>
    %77 = arith.mulf %75, %76 : vector<1x128xf32>
    %78 = arith.mulf %74, %74 : vector<1x128xf32>
    %79 = arith.subf %77, %78 : vector<1x128xf32>
    %cst_28 = arith.constant 9.99999974E-6 : f32
    %80 = vector.broadcast %cst_28 : f32 to vector<1x128xf32>
    %81 = arith.addf %79, %80 : vector<1x128xf32>
    %82 = math.rsqrt %81 : vector<1x128xf32>
    %83 = vector.broadcast %74 : vector<1x128xf32> to vector<32x128xf32>
    %84 = arith.subf %57, %83 : vector<32x128xf32>
    %c0_29 = arith.constant 0 : index
    %c0_30 = arith.constant 0 : index
    %85 = vector.load %arg4[%c0_29, %c0_30] : memref<1x128xf32, #tpu.memory_space<vmem>>, vector<1x128xf32>
    %86 = arith.mulf %82, %85 : vector<1x128xf32>
    %87 = vector.broadcast %86 : vector<1x128xf32> to vector<32x128xf32>
    %88 = arith.mulf %84, %87 : vector<32x128xf32>
    %c0_31 = arith.constant 0 : index
    %c0_32 = arith.constant 0 : index
    %89 = vector.load %arg5[%c0_31, %c0_32] : memref<1x128xf32, #tpu.memory_space<vmem>>, vector<1x128xf32>
    %90 = vector.broadcast %89 : vector<1x128xf32> to vector<32x128xf32>
    %91 = arith.addf %88, %90 : vector<32x128xf32>
    %cst_33 = arith.constant 0.000000e+00 : f32
    %92 = vector.broadcast %cst_33 : f32 to vector<32x128xf32>
    %93 = arith.maximumf %91, %92 : vector<32x128xf32>
    %c1_i32_34 = arith.constant 1 : i32
    %94 = tpu.dynamic_rotate %93 by %c1_i32_34 dim 0 : vector<32x128xf32>, i32 -> vector<32x128xf32>
    %cst_35 = arith.constant 0.000000e+00 : f32
    %95 = vector.broadcast %cst_35 : f32 to vector<32x128xf32>
    %96 = arith.select %19, %94, %95 : vector<32x128xi1>, vector<32x128xf32>
    %c31_i32_36 = arith.constant 31 : i32
    %97 = tpu.dynamic_rotate %93 by %c31_i32_36 dim 0 : vector<32x128xf32>, i32 -> vector<32x128xf32>
    %cst_37 = arith.constant 0.000000e+00 : f32
    %98 = vector.broadcast %cst_37 : f32 to vector<32x128xf32>
    %99 = arith.select %37, %97, %98 : vector<32x128xi1>, vector<32x128xf32>
    %100 = arith.truncf %96 : vector<32x128xf32> to vector<32x128xbf16>
    %c0_38 = arith.constant 0 : index
    %c0_39 = arith.constant 0 : index
    %c0_40 = arith.constant 0 : index
    %101 = vector.load %arg3[%c0_38, %c0_39, %c0_40] : memref<3x128x128xbf16, #tpu.memory_space<vmem>>, vector<1x128x128xbf16>
    %102 = vector.shape_cast %101 : vector<1x128x128xbf16> to vector<128x128xbf16>
    %cst_41 = arith.constant dense<0.000000e+00> : vector<32x128xf32>
    %103 = tpu.matmul %100, %102, %cst_41 {dimension_numbers = #tpu.dot_dimension_numbers<[1], [0], [0], [1], [0, 0, 1, 1], [], []>} : vector<32x128xbf16>, vector<128x128xbf16>, vector<32x128xf32> -> vector<32x128xf32>
    %104 = arith.truncf %93 : vector<32x128xf32> to vector<32x128xbf16>
    %c1_42 = arith.constant 1 : index
    %c0_43 = arith.constant 0 : index
    %c0_44 = arith.constant 0 : index
    %105 = vector.load %arg3[%c1_42, %c0_43, %c0_44] : memref<3x128x128xbf16, #tpu.memory_space<vmem>>, vector<1x128x128xbf16>
    %106 = vector.shape_cast %105 : vector<1x128x128xbf16> to vector<128x128xbf16>
    %cst_45 = arith.constant dense<0.000000e+00> : vector<32x128xf32>
    %107 = tpu.matmul %104, %106, %cst_45 {dimension_numbers = #tpu.dot_dimension_numbers<[1], [0], [0], [1], [0, 0, 1, 1], [], []>} : vector<32x128xbf16>, vector<128x128xbf16>, vector<32x128xf32> -> vector<32x128xf32>
    %108 = arith.addf %103, %107 : vector<32x128xf32>
    %109 = arith.truncf %99 : vector<32x128xf32> to vector<32x128xbf16>
    %c2_46 = arith.constant 2 : index
    %c0_47 = arith.constant 0 : index
    %c0_48 = arith.constant 0 : index
    %110 = vector.load %arg3[%c2_46, %c0_47, %c0_48] : memref<3x128x128xbf16, #tpu.memory_space<vmem>>, vector<1x128x128xbf16>
    %111 = vector.shape_cast %110 : vector<1x128x128xbf16> to vector<128x128xbf16>
    %cst_49 = arith.constant dense<0.000000e+00> : vector<32x128xf32>
    %112 = tpu.matmul %109, %111, %cst_49 {dimension_numbers = #tpu.dot_dimension_numbers<[1], [0], [0], [1], [0, 0, 1, 1], [], []>} : vector<32x128xbf16>, vector<128x128xbf16>, vector<32x128xf32> -> vector<32x128xf32>
    %113 = arith.addf %108, %112 : vector<32x128xf32>
    %cst_50 = arith.constant dense<0.000000e+00> : vector<128xf32>
    %114 = vector.multi_reduction <add>, %113, %cst_50 [0] : vector<32x128xf32> to vector<128xf32>
    %115 = vector.shape_cast %114 : vector<128xf32> to vector<1x128xf32>
    %116 = arith.mulf %113, %113 : vector<32x128xf32>
    %cst_51 = arith.constant dense<0.000000e+00> : vector<128xf32>
    %117 = vector.multi_reduction <add>, %116, %cst_51 [0] : vector<32x128xf32> to vector<128xf32>
    %118 = vector.shape_cast %117 : vector<128xf32> to vector<1x128xf32>
    %119 = tpu.concatenate %115, %118 in 0 : vector<1x128xf32>, vector<1x128xf32> -> vector<2x128xf32>
    %c8_i32_52 = arith.constant 8 : i32
    %120 = tpu.dynamic_rotate %119 by %c8_i32_52 dim 1 : vector<2x128xf32>, i32 -> vector<2x128xf32>
    %121 = arith.addf %119, %120 : vector<2x128xf32>
    %c16_i32_53 = arith.constant 16 : i32
    %122 = tpu.dynamic_rotate %121 by %c16_i32_53 dim 1 : vector<2x128xf32>, i32 -> vector<2x128xf32>
    %123 = arith.addf %121, %122 : vector<2x128xf32>
    %c32_i32_54 = arith.constant 32 : i32
    %124 = tpu.dynamic_rotate %123 by %c32_i32_54 dim 1 : vector<2x128xf32>, i32 -> vector<2x128xf32>
    %125 = arith.addf %123, %124 : vector<2x128xf32>
    %c64_i32_55 = arith.constant 64 : i32
    %126 = tpu.dynamic_rotate %125 by %c64_i32_55 dim 1 : vector<2x128xf32>, i32 -> vector<2x128xf32>
    %127 = arith.addf %125, %126 : vector<2x128xf32>
    %128 = vector.extract_strided_slice %127 {offsets = [0, 0], sizes = [1, 128], strides = [1, 1]} : vector<2x128xf32> to vector<1x128xf32>
    %cst_56 = arith.constant 0.001953125 : f32
    %129 = vector.broadcast %cst_56 : f32 to vector<1x128xf32>
    %130 = arith.mulf %128, %129 : vector<1x128xf32>
    %131 = vector.extract_strided_slice %127 {offsets = [1, 0], sizes = [1, 128], strides = [1, 1]} : vector<2x128xf32> to vector<1x128xf32>
    %cst_57 = arith.constant 0.001953125 : f32
    %132 = vector.broadcast %cst_57 : f32 to vector<1x128xf32>
    %133 = arith.mulf %131, %132 : vector<1x128xf32>
    %134 = arith.mulf %130, %130 : vector<1x128xf32>
    %135 = arith.subf %133, %134 : vector<1x128xf32>
    %cst_58 = arith.constant 9.99999974E-6 : f32
    %136 = vector.broadcast %cst_58 : f32 to vector<1x128xf32>
    %137 = arith.addf %135, %136 : vector<1x128xf32>
    %138 = math.rsqrt %137 : vector<1x128xf32>
    %139 = vector.broadcast %130 : vector<1x128xf32> to vector<32x128xf32>
    %140 = arith.subf %113, %139 : vector<32x128xf32>
    %c0_59 = arith.constant 0 : index
    %c0_60 = arith.constant 0 : index
    %141 = vector.load %arg6[%c0_59, %c0_60] : memref<1x128xf32, #tpu.memory_space<vmem>>, vector<1x128xf32>
    %142 = arith.mulf %138, %141 : vector<1x128xf32>
    %143 = vector.broadcast %142 : vector<1x128xf32> to vector<32x128xf32>
    %144 = arith.mulf %140, %143 : vector<32x128xf32>
    %c0_61 = arith.constant 0 : index
    %c0_62 = arith.constant 0 : index
    %145 = vector.load %arg7[%c0_61, %c0_62] : memref<1x128xf32, #tpu.memory_space<vmem>>, vector<1x128xf32>
    %146 = vector.broadcast %145 : vector<1x128xf32> to vector<32x128xf32>
    %147 = arith.addf %144, %146 : vector<32x128xf32>
    %148 = arith.addf %147, %0 : vector<32x128xf32>
    %cst_63 = arith.constant 0.000000e+00 : f32
    %149 = vector.broadcast %cst_63 : f32 to vector<32x128xf32>
    %150 = arith.maximumf %148, %149 : vector<32x128xf32>
    %c0_64 = arith.constant 0 : index
    %c0_65 = arith.constant 0 : index
    %151 = vector.load %arg8[%c0_64, %c0_65] : memref<32x128xf32, #tpu.memory_space<vmem>>, vector<32x128xf32>
    tpu.vector_store %arg8[%c0_64, %c0_65], %150 {strides = array<i32>} : memref<32x128xf32, #tpu.memory_space<vmem>>, vector<32x128xf32>,
    return
  }
  func.func @transform_0(%arg0: i32) -> (i32, i32) {
    %c0_i32 = arith.constant 0 : i32
    %c0_i32_0 = arith.constant 0 : i32
    %c0_i32_1 = arith.constant 0 : i32
    return %c0_i32, %c0_i32_0 : i32, i32
  }
  func.func @transform_1(%arg0: i32) -> (i32, i32, i32) {
    %c0_i32 = arith.constant 0 : i32
    %c0_i32_0 = arith.constant 0 : i32
    %c0_i32_1 = arith.constant 0 : i32
    %c0_i32_2 = arith.constant 0 : i32
    return %c0_i32, %c0_i32_0, %c0_i32_1 : i32, i32, i32
  }
  func.func @transform_2(%arg0: i32) -> (i32, i32, i32) {
    %c0_i32 = arith.constant 0 : i32
    %c0_i32_0 = arith.constant 0 : i32
    %c0_i32_1 = arith.constant 0 : i32
    %c0_i32_2 = arith.constant 0 : i32
    return %c0_i32, %c0_i32_0, %c0_i32_1 : i32, i32, i32
  }
  func.func @transform_3(%arg0: i32) -> (i32, i32) {
    %c0_i32 = arith.constant 0 : i32
    %c0_i32_0 = arith.constant 0 : i32
    %c0_i32_1 = arith.constant 0 : i32
    return %c0_i32, %c0_i32_0 : i32, i32
  }
  func.func @transform_4(%arg0: i32) -> (i32, i32) {
    %c0_i32 = arith.constant 0 : i32
    %c0_i32_0 = arith.constant 0 : i32
    %c0_i32_1 = arith.constant 0 : i32
    return %c0_i32, %c0_i32_0 : i32, i32
  }
  func.func @transform_5(%arg0: i32) -> (i32, i32) {
    %c0_i32 = arith.constant 0 : i32
    %c0_i32_0 = arith.constant 0 : i32
    %c0_i32_1 = arith.constant 0 : i32
    return %c0_i32, %c0_i32_0 : i32, i32
  }
  func.func @transform_6(%arg0: i32) -> (i32, i32) {
    %c0_i32 = arith.constant 0 : i32
    %c0_i32_0 = arith.constant 0 : i32
    %c0_i32_1 = arith.constant 0 : i32
    return %c0_i32, %c0_i32_0 : i32, i32
  }
  func.func @transform_7(%arg0: i32) -> (i32, i32) {
    %c0_i32 = arith.constant 0 : i32
    %c0_i32_0 = arith.constant 0 : i32
    %c0_i32_1 = arith.constant 0 : i32
    return %c0_i32, %c0_i32_0 : i32, i32
  }
}

</mosaic_0001>

<bundles_post_ra>
// kernel: tpu_custom_call.1
= control target key start
LH: loop header
LB: loop body
LE: loop exit
PB: predicated region body
PF: predicated region fallthrough
CT: control target
= control target key end

     0   :  { %12 = vsyncpa [#allocation3], 0  ;;  %s1536_s0 = inlined_call_operand.hbm [shape: f32[32,128], index: 0, kind: input, shape index: {}]   ;;  %s1537_s1 = inlined_call_operand.hbm [shape: bf16[3,128,128], index: 1, kind: input, shape index: {}]   ;;  %s1538_s2 = inlined_call_operand.hbm [shape: bf16[3,128,128], index: 2, kind: input, shape index: {}]   ;;  %s1539_s3 = inlined_call_operand.vmem [shape: f32[1,128], index: 3, kind: input, shape index: {}]   ;;  %s1540_s4 = inlined_call_operand.vmem [shape: f32[1,128], index: 4, kind: input, shape index: {}]   ;;  %s1541_s5 = inlined_call_operand.vmem [shape: f32[1,128], index: 5, kind: input, shape index: {}]   ;;  %s1542_s6 = inlined_call_operand.vmem [shape: f32[1,128], index: 6, kind: input, shape index: {}]   ;;  %s1543_s7 = inlined_call_operand.hbm [shape: f32[32,128], index: 7, kind: output, shape index: {}]  }
   0x1   :  { %13 = vsyncpa [#allocation6], 0  ;;  %s32_s26 = sshll.u32 %s1537_s1, 4  ;;  %s33_s26 = int_to_ptr.hbm [resolvable:$true] %s32_s26 }
   0x2   :  { %14 = vsyncpa [#allocation4], 0  ;;  %s1299_s27 = smov [#allocation5]   ;;  %s19_s8 = sshll.u32 %s1536_s0, 4  ;;  %s20_s8 = int_to_ptr.hbm [resolvable:$true] %s19_s8 }
   0x3   :  { %s34_s28 = sshll.u32 %s1299_s27, 4  ;;  %s1300_s9 = smov 64   ;;  %s35_s28 = int_to_ptr.vmem [resolvable:$true] %s34_s28 }
   0x4   :  { %s1301_s10 = smov 4   ;;  %s1302_s11 = smov [#allocation2]  }
   0x5   :  { %40 = dma.hbm_to_vmem [thread:$0]  %s33_s26, 3072, %s35_s28, [#allocation6], %s1300_s9, %s1300_s9, %s1301_s10  }
   0x6   :  { %s21_s12 = sshll.u32 %s1302_s11, 4  ;;  %s1303_s13 = smov 128   ;;  %s22_s12 = int_to_ptr.vmem [resolvable:$true] %s21_s12 }
   0x7   :  { %s1304_s1 = smov 8   ;;  %s45_s16 = sshll.u32 %s1538_s2, 4  ;;  %s46_s16 = int_to_ptr.hbm [resolvable:$true] %s45_s16 }
   0x8   :  { %27 = dma.hbm_to_vmem [thread:$0]  %s20_s8, 512, %s22_s12, [#allocation3], %s1303_s13, %s1303_s13, %s1304_s1  }
   0x9   :  { %s1305_s0 = smov [#allocation7]  }
   0xa   :  { %s47_s17 = sshll.u32 %s1305_s0, 4  ;;  %s48_s17 = int_to_ptr.vmem [resolvable:$true] %s47_s17 }
   0xb   :  { %53 = dma.hbm_to_vmem [thread:$0]  %s46_s16, 3072, %s48_s17, [#allocation6], %s1300_s9, %s1300_s9, %s1301_s10  }
   0xc   :  { %1293 = dma.done.wait [#allocation3], 512  }
   0xd   :  { %1294 = vsyncadd [#allocation3], 4294966784 }
   0xe   :  { %1295 = dma.done.wait [#allocation6], 6144  }
   0xf   :  { %1296 = vsyncadd [#allocation6], 4294961152  ;;  %v1129_v0 = vld [vmem:[#allocation5 + $0x78] sm:$0xff]  ;;  %v1128_v3 = vld [vmem:[#allocation5 + $0x70] sm:$0xff]  ;;  %v78_v12 = vlaneseq  ;;  %vm1306_vm4 = vmmov 1   ;;  %vm448_vm11 = vcmask 1040384  }
  0x10   :  { %v1121_v1 = vld [vmem:[#allocation5 + $0x38] sm:$0xff]  ;;  %250 = vmatpush.bf16.msra.mxu0 %v1129_v0  ;;  %v1120_v4 = vld [vmem:[#allocation5 + $0x30] sm:$0xff]  ;;  %v1127_v6 = vld [vmem:[#allocation5 + $0x68] sm:$0xff]  ;;  %s1307_s2 = smov 16   ;;  %s1308_s18 = smov 32  }
  0x11   :  { %v1137_v2 = vld [vmem:[#allocation5 + $0xb8] sm:$0xff]  ;;  %317 = vmatpush.bf16.msra.mxu1 %v1121_v1  ;;  %v1136_v5 = vld [vmem:[#allocation5 + $0xb0] sm:$0xff]  ;;  %v1119_v7 = vld [vmem:[#allocation5 + $0x28] sm:$0xff]  ;;  %v1366_v16 = vshrl.u32 %v78_v12, 7  ;;  %s884_s27 = sshll.u32 %s1543_s7, 4  ;;  %s885_s27 = int_to_ptr.hbm [resolvable:$true] %s884_s27 }
  0x12   :  { %403 = vmatpush.bf16.msra.mxu2 %v1137_v2  ;;  %v1135_v8 = vld [vmem:[#allocation5 + $0xa8] sm:$0xff]  ;;  %v1126_v9 = vld [vmem:[#allocation5 + $0x60] sm:$0xff]  ;;  %v1125_v13 = vld [vmem:[#allocation5 + $0x58] sm:$0xff] }
  0x13   :  { %v1118_v10 = vld [vmem:[#allocation5 + $0x20] sm:$0xff]  ;;  %v1117_v14 = vld [vmem:[#allocation5 + $0x18] sm:$0xff]  ;;  %v1124_v17 = vld [vmem:[#allocation5 + $0x50] sm:$0xff]  ;;  %v80_v24 = vadd.s32 8, %v1366_v16  ;;  %v87_v27 = vand.u32 15, %v1366_v16  ;;  %vm143_vm0 = vcmp.lt.s32.totalorder %v1366_v16, 1 }
  0x14   :  { %251 = vmatpush.bf16.msra.mxu0 %v1128_v3  ;;  %v1134_v11 = vld [vmem:[#allocation5 + $0xa0] sm:$0xff]  ;;  %v1133_v15 = vld [vmem:[#allocation5 + $0x98] sm:$0xff]  ;;  %v1116_v18 = vld [vmem:[#allocation5 + $0x10] sm:$0xff]  ;;  %vm156_vm1 = vcmp.lt.s32.totalorder %v1366_v16, 7  ;;  %v81_v48 = vadd.s32 16, %v1366_v16  ;;  %v82_v49 = vadd.s32 24, %v1366_v16 }
  0x15   :  { %318 = vmatpush.bf16.msra.mxu1 %v1120_v4  ;;  %v1132_v19 = vld [vmem:[#allocation5 + $0x90] sm:$0xff]  ;;  %v1368_v20 = vld [vmem:[#allocation2] sm:$0xff]  ;;  %v1370_v21 = vld [vmem:[#allocation2 + $0x8] sm:$0xff]  ;;  %v94_v35 = vand.u32 15, %v80_v24  ;;  %vm131_vm2 = vcmp.ne.s32.totalorder %v87_v27, 0 }
  0x16   :  { %404 = vmatpush.bf16.msra.mxu2 %v1136_v5  ;;  %v1372_v22 = vld [vmem:[#allocation2 + $0x18] sm:$0xff]  ;;  %v1374_v23 = vld [vmem:[#allocation2 + $0x10] sm:$0xff]  ;;  %v1123_v25 = vld [vmem:[#allocation5 + $0x48] sm:$0xff]  ;;  %v139_v28 = vrot.slane %v1368_v20, 7  ;;  %v140_v29 = vrot.slane %v1370_v21, 7  ;;  %v152_v32 = vrot.slane %v1368_v20, 1  ;;  %v183_v43 = vpack.c.bf16 %v1370_v21, %v1368_v20 }
  0x17   :  { %v1115_v26 = vld [vmem:[#allocation5 + $0x8] sm:$0xff]  ;;  %v142_v30 = vrot.slane %v1372_v22, 7  ;;  %v153_v33 = vrot.slane %v1370_v21, 1  ;;  %v154_v34 = vrot.slane %v1374_v23, 1  ;;  %v1122_v36 = vld [vmem:[#allocation5 + $0x40] sm:$0xff]  ;;  %vm136_vm3 = vcmp.ne.s32.totalorder %v94_v35, 15  ;;  %vm1397_vm5 = vmpackc.low %vm1306_vm4, %vm131_vm2 }
  0x18   :  { %252 = vmatpush.bf16.msra.mxu0 %v1127_v6  ;;  %v1131_v31 = vld [vmem:[#allocation5 + $0x88] sm:$0xff]  ;;  %v1114_v37 = vld [vmem:[#allocation5] sm:$0xff]  ;;  %v146_v38 = vsel %vm143_vm0, %v139_v28, %v140_v29  ;;  %vm1402_vm6 = vmpackc.low %vm136_vm3, %vm1306_vm4  ;;  %v141_v50 = vrot.slane %v1374_v23, 7  ;;  %v101_v51 = vand.u32 15, %v81_v48  ;;  %v155_v52 = vrot.slane %v1372_v22, 1 }
  0x19   :  { %319 = vmatpush.bf16.msra.mxu1 %v1119_v7  ;;  %v147_v39 = vsel %vm143_vm0, %v142_v30, %v139_v28  ;;  %v1130_v40 = vld [vmem:[#allocation5 + $0x80] sm:$0xff]  ;;  %v158_v41 = vsel %vm156_vm1, %v153_v33, %v154_v34  ;;  %v159_v42 = vsel %vm156_vm1, %v152_v32, %v153_v33  ;;  %v108_v53 = vand.u32 15, %v82_v49 }
  0x1a   :  { %405 = vmatpush.bf16.msra.mxu2 %v1135_v8  ;;  %v963_v44 = vpack.c.bf16 %v146_v38, %v147_v39  ;;  %v1001_v46 = vpack.c.bf16 %v158_v41, %v159_v42  ;;  %v144_v54 = vsel %vm143_vm0, %v141_v50, %v142_v30  ;;  %v145_v55 = vsel %vm143_vm0, %v140_v29, %v141_v50 }
  0x1b   :  { %vm133_vm7 = vcmp.ne.s32.totalorder %v101_v51, 0  ;;  %v157_v56 = vsel %vm156_vm1, %v154_v34, %v155_v52  ;;  %v160_v57 = vsel %vm156_vm1, %v155_v52, %v152_v32  ;;  %vm138_vm8 = vcmp.ne.s32.totalorder %v108_v53, 15 }
  0x1c   :  { %253 = vmatpush.bf16.msra.mxu0 %v1126_v9  ;;  %v184_v58 = vpack.c.bf16 %v1372_v22, %v1374_v23  ;;  %v966_v59 = vpack.c.bf16 %v144_v54, %v145_v55  ;;  %vm1425_vm9 = vmpackc.low %vm1306_vm4, %vm133_vm7  ;;  %v1004_v61 = vpack.c.bf16 %v160_v57, %v157_v56  ;;  %v1153_v55 = vld [vmem:[#allocation7 + $0x78] sm:$0xff] }
  0x1d   :  { %320 = vmatpush.bf16.msra.mxu1 %v1118_v10  ;;  %vm1430_vm10 = vmpackc.low %vm138_vm8, %vm1306_vm4  ;;  %615 = vmatpush.bf16.msra.mxu3 %v1153_v55  ;;  %v1145_v56 = vld [vmem:[#allocation7 + $0x38] sm:$0xff] }
  0x1e   :  { %406 = vmatpush.bf16.msra.mxu2 %v1134_v11  ;;  %v1161_v57 = vld [vmem:[#allocation7 + $0xb8] sm:$0xff] }
  0x20   :  { %254 = vmatpush.bf16.msra.mxu0 %v1125_v13 }
  0x21   :  { %321 = vmatpush.bf16.msra.mxu1 %v1117_v14 }
  0x22   :  { %407 = vmatpush.bf16.msra.mxu2 %v1133_v15 }
  0x24   :  { %255 = vmatpush.bf16.msra.mxu0 %v1124_v17 }
  0x25   :  { %322 = vmatpush.bf16.msra.mxu1 %v1116_v18 }
  0x26   :  { %408 = vmatpush.bf16.msra.mxu2 %v1132_v19 }
  0x28   :  { %256 = vmatpush.bf16.msra.mxu0 %v1123_v25 }
  0x29   :  { %323 = vmatpush.bf16.msra.mxu1 %v1115_v26 }
  0x2a   :  { %409 = vmatpush.bf16.msra.mxu2 %v1131_v31 }
  0x2c   :  { %257 = vmatpush.bf16.msra.mxu0 %v1122_v36 }
  0x2d   :  { %324 = vmatpush.bf16.msra.mxu1 %v1114_v37 }
  0x2e   :  { %410 = vmatpush.bf16.msra.mxu2 %v1130_v40 }
  0x2f   :  { %258 = vmatmul.bf16.vlgmr.msra.gmra.mxu0 %v183_v43 }
  0x30   :  { %964 = vmatmul.msk.bf16.vlgmr.msra.gmra.mxu1 %vm1397_vm5, %v963_v44  ;;  %682 = vmatpush.bf16.msrb.mxu0 %v1145_v56 }
  0x31   :  { %1002 = vmatmul.msk.bf16.vlgmr.msra.gmra.mxu2 %vm1402_vm6, %v1001_v46  ;;  %768 = vmatpush.bf16.msrb.mxu1 %v1161_v57 }
  0x32   :  { %1162 = vmatpush.bf16.msrb.mxu2 %v1145_v56 }
  0x3f   :  { %263 = vmatmul.bf16.gmra.mxu0 %v184_v58  ;;  %v1152_v58 = vld [vmem:[#allocation7 + $0x70] sm:$0xff] }
  0x40   :  { %967 = vmatmul.msk.bf16.gmra.mxu1 %vm1425_vm9, %v966_v59  ;;  %616 = vmatpush.bf16.msra.mxu3 %v1152_v58  ;;  %v1144_v59 = vld [vmem:[#allocation7 + $0x30] sm:$0xff] }
  0x41   :  { %1005 = vmatmul.msk.bf16.gmra.mxu2 %vm1430_vm10, %v1004_v61  ;;  %v1160_v61 = vld [vmem:[#allocation7 + $0xb0] sm:$0xff]  ;;  %683 = vmatpush.bf16.msrb.mxu0 %v1144_v59 }
  0x42   :  { %1163 = vmatpush.bf16.msrb.mxu2 %v1144_v59  ;;  %769 = vmatpush.bf16.msrb.mxu1 %v1160_v61 }
  0xac   :  { %v259_v63 = vpop.f32.mrf.mxu0 }
  0xad   :  { %v326_v0 = vpop.f32.mrf.mxu1 }
  0xae   :  { %v327_v7 = vadd.f32 %v326_v0, %v259_v63  ;;  %v1151_v63 = vld [vmem:[#allocation7 + $0x68] sm:$0xff] }
  0xaf   :  { %617 = vmatpush.bf16.msra.mxu3 %v1151_v63  ;;  %v1143_v0 = vld [vmem:[#allocation7 + $0x28] sm:$0xff] }
  0xb0   :  { %684 = vmatpush.bf16.msrb.mxu0 %v1143_v0  ;;  %1164 = vmatpush.bf16.msrb.mxu2 %v1143_v0 }
  0xb4   :  { %v412_v1 = vpop.f32.mrf.mxu2  ;;  %v261_v2 = vpop.f32.mrf.mxu0 }
  0xb5   :  { %v328_v3 = vpop.f32.mrf.mxu1  ;;  %v1440_v12 = vadd.f32 %v412_v1, %v327_v7  ;;  %v1159_v1 = vld [vmem:[#allocation7 + $0xa8] sm:$0xff]  ;;  %v1157_v7 = vld [vmem:[#allocation7 + $0x98] sm:$0xff] }
  0xb6   :  { %v329_v8 = vadd.f32 %v328_v3, %v261_v2  ;;  %v1150_v2 = vld [vmem:[#allocation7 + $0x60] sm:$0xff]  ;;  %770 = vmatpush.bf16.msrb.mxu1 %v1159_v1 }
  0xb7   :  { %v435_v18 = vmul.f32 %v1440_v12, %v1440_v12  ;;  %618 = vmatpush.bf16.msra.mxu3 %v1150_v2  ;;  %v1142_v3 = vld [vmem:[#allocation7 + $0x20] sm:$0xff] }
  0xb8   :  { %685 = vmatpush.bf16.msrb.mxu0 %v1142_v3  ;;  %1165 = vmatpush.bf16.msrb.mxu2 %v1142_v3 }
  0xbc   :  { %v414_v4 = vpop.f32.mrf.mxu2  ;;  %v264_v5 = vpop.f32.mrf.mxu0 }
  0xbd   :  { %v331_v6 = vpop.f32.mrf.mxu1  ;;  %v1438_v11 = vadd.f32 %v414_v4, %v329_v8  ;;  %v1158_v4 = vld [vmem:[#allocation7 + $0xa0] sm:$0xff]  ;;  %v1148_v8 = vld [vmem:[#allocation7 + $0x50] sm:$0xff] }
  0xbe   :  { %v332_v9 = vadd.f32 %v331_v6, %v264_v5  ;;  %v1149_v5 = vld [vmem:[#allocation7 + $0x58] sm:$0xff]  ;;  %771 = vmatpush.bf16.msrb.mxu1 %v1158_v4 }
  0xbf   :  { %v436_v17 = vmul.f32 %v1438_v11, %v1438_v11  ;;  %v426_v19 = vadd.f32 %v1438_v11, %v1440_v12  ;;  %619 = vmatpush.bf16.msra.mxu3 %v1149_v5  ;;  %v1141_v6 = vld [vmem:[#allocation7 + $0x18] sm:$0xff] }
  0xc0   :  { %686 = vmatpush.bf16.msrb.mxu0 %v1141_v6  ;;  %1166 = vmatpush.bf16.msrb.mxu2 %v1141_v6 }
  0xc1   :  { %v439_v27 = vadd.f32 %v436_v17, %v435_v18  ;;  %v1147_v17 = vld [vmem:[#allocation7 + $0x48] sm:$0xff] }
  0xc2   :  { %772 = vmatpush.bf16.msrb.mxu1 %v1157_v7 }
  0xc3   :  { %620 = vmatpush.bf16.msra.mxu3 %v1148_v8 }
  0xc4   :  { %v417_v10 = vpop.f32.mrf.mxu2  ;;  %v266_v14 = vpop.f32.mrf.mxu0 }
  0xc5   :  { %v1442_v13 = vadd.f32 %v417_v10, %v332_v9  ;;  %v333_v15 = vpop.f32.mrf.mxu1 }
  0xc6   :  { %v334_v25 = vadd.f32 %v333_v15, %v266_v14  ;;  %v1140_v14 = vld [vmem:[#allocation7 + $0x10] sm:$0xff] }
  0xc7   :  { %v437_v24 = vmul.f32 %v1442_v13, %v1442_v13  ;;  %v427_v28 = vadd.f32 %v426_v19, %v1442_v13  ;;  %v1156_v15 = vld [vmem:[#allocation7 + $0x90] sm:$0xff]  ;;  %687 = vmatpush.bf16.msrb.mxu0 %v1140_v14  ;;  %1167 = vmatpush.bf16.msrb.mxu2 %v1140_v14  ;;  %v1139_v19 = vld [vmem:[#allocation7 + $0x8] sm:$0xff] }
  0xc8   :  { %773 = vmatpush.bf16.msrb.mxu1 %v1156_v15  ;;  %621 = vmatpush.bf16.msra.mxu3 %v1147_v17 }
  0xc9   :  { %v440_v30 = vadd.f32 %v439_v27, %v437_v24  ;;  %v1155_v24 = vld [vmem:[#allocation7 + $0x88] sm:$0xff] }
  0xcb   :  { %688 = vmatpush.bf16.msrb.mxu0 %v1139_v19  ;;  %1168 = vmatpush.bf16.msrb.mxu2 %v1139_v19 }
  0xcc   :  { %v419_v26 = vpop.f32.mrf.mxu2  ;;  %774 = vmatpush.bf16.msrb.mxu1 %v1155_v24 }
  0xcd   :  { %v1453_v29 = vadd.f32 %v419_v26, %v334_v25  ;;  %v1146_v25 = vld [vmem:[#allocation7 + $0x40] sm:$0xff] }
  0xce   :  { %622 = vmatpush.bf16.msra.mxu3 %v1146_v25 }
  0xcf   :  { %v428_v31 = vadd.f32 %v427_v28, %v1453_v29  ;;  %v438_v32 = vmul.f32 %v1453_v29, %v1453_v29 }
  0xd1   :  { %v429_v33 = vrot.slane %v428_v31, 4  ;;  %v441_v34 = vadd.f32 %v440_v30, %v438_v32  ;;  %v1138_v30 = vld [vmem:[#allocation7] sm:$0xff] }
  0xd2   :  { %1170 = vmatpush.bf16.msrb.mxu3 %v1161_v57  ;;  %689 = vmatpush.bf16.msrb.mxu0 %v1138_v30 }
  0xd3   :  { %v430_v35 = vadd.f32 %v429_v33, %v428_v31  ;;  %v442_v36 = vrot.slane %v441_v34, 4  ;;  %v1154_v31 = vld [vmem:[#allocation7 + $0x80] sm:$0xff]  ;;  %1169 = vmatpush.bf16.msrb.mxu2 %v1138_v30 }
  0xd4   :  { %775 = vmatpush.bf16.msrb.mxu1 %v1154_v31 }
  0xd5   :  { %v431_v37 = vrot.slane %v430_v35, 2  ;;  %v443_v38 = vadd.f32 %v442_v36, %v441_v34 }
  0xd6   :  { %1171 = vmatpush.bf16.msrb.mxu3 %v1160_v61 }
  0xd7   :  { %v432_v39 = vadd.f32 %v431_v37, %v430_v35  ;;  %v444_v40 = vrot.slane %v443_v38, 2 }
  0xd9   :  { %v433_v41 = vrot.slane %v432_v39, 1  ;;  %v445_v42 = vadd.f32 %v444_v40, %v443_v38  ;;  %v1189_v38 = vld [vmem:[%s1539_s3] ss:$0 sm:$0xff] }
  0xda   :  { %1172 = vmatpush.bf16.msrb.mxu3 %v1159_v1 }
  0xdb   :  { %v446_v43 = vrot.slane %v445_v42, 1  ;;  %v434_v44 = vadd.f32 %v433_v41, %v432_v39 }
  0xdd   :  { %v447_v46 = vadd.f32 %v446_v43, %v445_v42 }
  0xde   :  { %1173 = vmatpush.bf16.msrb.mxu3 %v1158_v4 }
  0xdf   :  { %v449_v48 = vsel %vm448_vm11, %v434_v44, %v447_v46 }
  0xe0   :  { %450 = vrot.lane.b32.xlu0 %v449_v48, %s1304_s1 }
  0xe2   :  { %1174 = vmatpush.bf16.msrb.mxu3 %v1157_v7 }
  0xe6   :  { %1175 = vmatpush.bf16.msrb.mxu3 %v1156_v15 }
  0xea   :  { %1176 = vmatpush.bf16.msrb.mxu3 %v1155_v24 }
  0xee   :  { %1177 = vmatpush.bf16.msrb.mxu3 %v1154_v31 }
 0x152   :  { %v451_v49 = vpop.permute.xlu0 %450 }
 0x153   :  { %v452_v50 = vadd.f32 %v451_v49, %v449_v48 }
 0x155   :  { %453 = vrot.lane.b32.xlu0 %v452_v50, %s1307_s2 }
 0x1c7   :  { %v454_v51 = vpop.permute.xlu0 %453 }
 0x1c8   :  { %v455_v52 = vadd.f32 %v454_v51, %v452_v50  ;;  %v1190_v50 = vld [vmem:[%s1540_s4] ss:$0 sm:$0xff] }
 0x1ca   :  { %456 = vrot.lane.b32.xlu1 %v455_v52, %s1308_s18 }
 0x23c   :  { %v457_v53 = vpop.permute.xlu1 %456 }
 0x23d   :  { %v458_v54 = vadd.f32 %v457_v53, %v455_v52 }
 0x23f   :  { %459 = vrot.lane.b32.xlu1 %v458_v54, %s1300_s9 }
 0x2b1   :  { %v460_v9 = vpop.permute.xlu1 %459 }
 0x2b2   :  { %v461_v10 = vadd.f32 %v460_v9, %v458_v54 }
 0x2b4   :  { %v462_v18 = vmul.f32 0.001953125, %v461_v10 }
 0x2b6   :  { %v463_v26 = vmul.f32 %v462_v18, %v462_v18  ;;  %v479_v40 = vperm.slane %v462_v18, 0 }
 0x2b8   :  { %v465_v27 = vrot.slane %v463_v26, 7  ;;  %v482_v43 = vsub.f32 %v1442_v13, %v479_v40  ;;  %v483_v44 = vsub.f32 %v1453_v29, %v479_v40  ;;  %v480_v48 = vsub.f32 %v1440_v12, %v479_v40 }
 0x2b9   :  { %v481_v49 = vsub.f32 %v1438_v11, %v479_v40 }
 0x2ba   :  { %v467_v28 = vsub.f32 %v462_v18, %v465_v27 }
 0x2bc   :  { %v468_v32 = vadd.f32 1e-05, %v467_v28 }
 0x2be   :  { %1193 = vrsqrt.f32 %v468_v32  ;;  %vm475_vm13 = vweird.f32 %v468_v32 }
 0x2c4   :  { %v1194_v33 = vpop.eup %1193 }
 0x2c5   :  { %v470_v34 = vmul.f32 %v1194_v33, %v468_v32  ;;  %vm476_vm12 = vweird.f32 %v1194_v33 }
 0x2c6   :  { %vm477_vm14 = vmor %vm475_vm13, %vm476_vm12 }
 0x2c7   :  { %v471_v35 = vmul.f32 %v1194_v33, %v470_v34 }
 0x2c9   :  { %v472_v36 = vmul.f32 0.5, %v471_v35 }
 0x2cb   :  { %v473_v37 = vsub.f32 1.5, %v472_v36 }
 0x2cd   :  { %v474_v39 = vmul.f32 %v1194_v33, %v473_v37 }
 0x2cf   :  { %v478_v41 = vsel %vm477_vm14, %v1194_v33, %v474_v39 }
 0x2d0   :  { %v488_v42 = vmul.f32 %v1189_v38, %v478_v41 }
 0x2d2   :  { %v489_v46 = vperm.slane %v488_v42, 1 }
 0x2d4   :  { %v492_v51 = vmul.f32 %v489_v46, %v482_v43  ;;  %v493_v52 = vmul.f32 %v489_v46, %v483_v44  ;;  %v490_v53 = vmul.f32 %v489_v46, %v480_v48  ;;  %v491_v54 = vmul.f32 %v489_v46, %v481_v49 }
 0x2d6   :  { %v498_v55 = vadd.f32 %v1190_v50, %v490_v53  ;;  %v499_v56 = vadd.f32 %v1190_v50, %v491_v54  ;;  %v501_v57 = vadd.f32 %v1190_v50, %v493_v52  ;;  %v500_v13 = vadd.f32 %v1190_v50, %v492_v51 }
 0x2d8   :  { %v502_v29 = vmax.f32 %v498_v55, 0.0  ;;  %v503_v58 = vmax.f32 %v499_v56, 0.0  ;;  %v505_v59 = vmax.f32 %v501_v57, 0.0  ;;  %v504_v12 = vmax.f32 %v500_v13, 0.0 }
 0x2da   :  { %v506_v61 = vrot.slane %v502_v29, 7  ;;  %v507_v11 = vrot.slane %v503_v58, 7  ;;  %v518_v63 = vrot.slane %v502_v29, 1  ;;  %v519_v0 = vrot.slane %v503_v58, 1 }
 0x2db   :  { %v548_v1 = vpack.c.bf16 %v503_v58, %v502_v29  ;;  %v509_v2 = vrot.slane %v505_v59, 7  ;;  %v508_v3 = vrot.slane %v504_v12, 7  ;;  %v520_v4 = vrot.slane %v504_v12, 1 }
 0x2dc   :  { %v512_v5 = vsel %vm143_vm0, %v506_v61, %v507_v11  ;;  %v524_v6 = vsel %vm156_vm1, %v518_v63, %v519_v0  ;;  %v549_v18 = vpack.c.bf16 %v505_v59, %v504_v12  ;;  %v521_v19 = vrot.slane %v505_v59, 1 }
 0x2dd   :  { %623 = vmatmul.bf16.vlgmr.msra.gmra.mxu3 %v548_v1  ;;  %v513_v7 = vsel %vm143_vm0, %v509_v2, %v506_v61  ;;  %v510_v8 = vsel %vm143_vm0, %v508_v3, %v509_v2  ;;  %v511_v9 = vsel %vm143_vm0, %v507_v11, %v508_v3  ;;  %v523_v10 = vsel %vm156_vm1, %v519_v0, %v520_v4 }
 0x2de   :  { %v1071_v14 = vpack.c.bf16 %v512_v5, %v513_v7  ;;  %v1074_v15 = vpack.c.bf16 %v510_v8, %v511_v9  ;;  %v1109_v17 = vpack.c.bf16 %v523_v10, %v524_v6  ;;  %v522_v24 = vsel %vm156_vm1, %v520_v4, %v521_v19 }
 0x2df   :  { %v525_v25 = vsel %vm156_vm1, %v521_v19, %v518_v63 }
 0x2e0   :  { %1072 = vmatmul.msk.bf16.vlgmr.msrb.gmra.mxu0 %vm1397_vm5, %v1071_v14  ;;  %1075 = vmatmul.msk.bf16.vlgmr.msrb.gmra.mxu2 %vm1425_vm9, %v1074_v15  ;;  %v1112_v26 = vpack.c.bf16 %v525_v25, %v522_v24 }
 0x2e1   :  { %1110 = vmatmul.msk.bf16.vlgmr.msrb.gmra.mxu1 %vm1402_vm6, %v1109_v17 }
 0x2ed   :  { %628 = vmatmul.bf16.gmra.mxu3 %v549_v18 }
 0x2fd   :  { %1113 = vmatmul.msk.bf16.vlgmr.msrb.gmra.mxu3 %vm1430_vm10, %v1112_v26 }
 0x35d   :  { %v691_v28 = vpop.f32.mrf.mxu0 }
 0x35e   :  { %v777_v30 = vpop.f32.mrf.mxu1 }
 0x360   :  { %v624_v45 = vpop.f32.mrf.mxu3 }
 0x361   :  { %v692_v34 = vadd.f32 %v691_v28, %v624_v45 }
 0x363   :  { %v696_v31 = vpop.f32.mrf.mxu2  ;;  %v1499_v38 = vadd.f32 %v777_v30, %v692_v34 }
 0x365   :  { %v693_v32 = vpop.f32.mrf.mxu0  ;;  %v800_v41 = vmul.f32 %v1499_v38, %v1499_v38 }
 0x366   :  { %v779_v35 = vpop.f32.mrf.mxu1 }
 0x368   :  { %v626_v27 = vpop.f32.mrf.mxu3 }
 0x369   :  { %v694_v33 = vadd.f32 %v693_v32, %v626_v27  ;;  %v1191_v27 = vld [vmem:[%s1541_s5] ss:$0 sm:$0xff]  ;;  %s1309_s5 = smov [#allocation8]  }
 0x36b   :  { %v1497_v37 = vadd.f32 %v779_v35, %v694_v33  ;;  %v698_v40 = vpop.f32.mrf.mxu2 }
 0x36d   :  { %v801_v62 = vmul.f32 %v1497_v37, %v1497_v37  ;;  %v791_v43 = vadd.f32 %v1497_v37, %v1499_v38 }
 0x36f   :  { %v804_v49 = vadd.f32 %v801_v62, %v800_v41 }
 0x370   :  { %v629_v60 = vpop.f32.mrf.mxu3 }
 0x371   :  { %v697_v16 = vadd.f32 %v696_v31, %v629_v60 }
 0x378   :  { %v631_v47 = vpop.f32.mrf.mxu3 }
 0x379   :  { %v699_v42 = vadd.f32 %v698_v40, %v631_v47 }
 0x380   :  { %v782_v36 = vpop.f32.mrf.mxu3 }
 0x381   :  { %v1501_v39 = vadd.f32 %v782_v36, %v697_v16  ;;  %v1192_v36 = vld [vmem:[%s1542_s6] ss:$0 sm:$0xff]  ;;  %s882_s6 = sshll.u32 %s1309_s5, 4  ;;  %s883_s6 = int_to_ptr.vmem [resolvable:$true] %s882_s6 }
 0x383   :  { %v802_v44 = vmul.f32 %v1501_v39, %v1501_v39  ;;  %v792_v48 = vadd.f32 %v791_v43, %v1501_v39 }
 0x385   :  { %v805_v51 = vadd.f32 %v804_v49, %v802_v44 }
 0x388   :  { %v784_v46 = vpop.f32.mrf.mxu3 }
 0x389   :  { %v790_v50 = vadd.f32 %v784_v46, %v699_v42 }
 0x38b   :  { %v793_v52 = vadd.f32 %v792_v48, %v790_v50  ;;  %v803_v53 = vmul.f32 %v790_v50, %v790_v50 }
 0x38d   :  { %v794_v54 = vrot.slane %v793_v52, 4  ;;  %v806_v55 = vadd.f32 %v805_v51, %v803_v53 }
 0x38f   :  { %v795_v56 = vadd.f32 %v794_v54, %v793_v52  ;;  %v807_v57 = vrot.slane %v806_v55, 4 }
 0x391   :  { %v796_v13 = vrot.slane %v795_v56, 2  ;;  %v808_v29 = vadd.f32 %v807_v57, %v806_v55 }
 0x393   :  { %v797_v58 = vadd.f32 %v796_v13, %v795_v56  ;;  %v809_v59 = vrot.slane %v808_v29, 2 }
 0x395   :  { %v798_v12 = vrot.slane %v797_v58, 1  ;;  %v810_v61 = vadd.f32 %v809_v59, %v808_v29 }
 0x397   :  { %v811_v11 = vrot.slane %v810_v61, 1  ;;  %v799_v63 = vadd.f32 %v798_v12, %v797_v58 }
 0x399   :  { %v812_v0 = vadd.f32 %v811_v11, %v810_v61 }
 0x39b   :  { %v813_v1 = vsel %vm448_vm11, %v799_v63, %v812_v0 }
 0x39c   :  { %814 = vrot.lane.b32.xlu2 %v813_v1, %s1304_s1 }
 0x3f6   :  { %v815_v2 = vpop.permute.xlu2 %814 }
 0x3f7   :  { %v816_v3 = vadd.f32 %v815_v2, %v813_v1 }
 0x3f9   :  { %817 = vrot.lane.b32.xlu2 %v816_v3, %s1307_s2 }
 0x453   :  { %v818_v4 = vpop.permute.xlu2 %817 }
 0x454   :  { %v819_v5 = vadd.f32 %v818_v4, %v816_v3 }
 0x456   :  { %820 = vrot.lane.b32.xlu0 %v819_v5, %s1308_s18 }
 0x4c8   :  { %v821_v6 = vpop.permute.xlu0 %820 }
 0x4c9   :  { %v822_v7 = vadd.f32 %v821_v6, %v819_v5 }
 0x4cb   :  { %823 = vrot.lane.b32.xlu1 %v822_v7, %s1300_s9 }
 0x53d   :  { %v824_v8 = vpop.permute.xlu1 %823 }
 0x53e   :  { %v825_v9 = vadd.f32 %v824_v8, %v822_v7 }
 0x540   :  { %v826_v10 = vmul.f32 0.001953125, %v825_v9 }
 0x542   :  { %v827_v14 = vmul.f32 %v826_v10, %v826_v10  ;;  %v843_v28 = vperm.slane %v826_v10, 0 }
 0x544   :  { %v829_v15 = vrot.slane %v827_v14, 7  ;;  %v844_v31 = vsub.f32 %v1499_v38, %v843_v28  ;;  %v845_v32 = vsub.f32 %v1497_v37, %v843_v28  ;;  %v846_v33 = vsub.f32 %v1501_v39, %v843_v28 }
 0x545   :  { %v847_v34 = vsub.f32 %v790_v50, %v843_v28 }
 0x546   :  { %v831_v17 = vsub.f32 %v826_v10, %v829_v15 }
 0x548   :  { %v832_v18 = vadd.f32 1e-05, %v831_v17 }
 0x54a   :  { %1195 = vrsqrt.f32 %v832_v18  ;;  %vm839_vm0 = vweird.f32 %v832_v18 }
 0x550   :  { %v1196_v19 = vpop.eup %1195 }
 0x551   :  { %v834_v24 = vmul.f32 %v1196_v19, %v832_v18  ;;  %vm840_vm15 = vweird.f32 %v1196_v19 }
 0x552   :  { %vm841_vm1 = vmor %vm839_vm0, %vm840_vm15 }
 0x553   :  { %v835_v25 = vmul.f32 %v1196_v19, %v834_v24 }
 0x555   :  { %v836_v26 = vmul.f32 0.5, %v835_v25 }
 0x557   :  { %v837_v45 = vsub.f32 1.5, %v836_v26 }
 0x559   :  { %v838_v60 = vmul.f32 %v1196_v19, %v837_v45 }
 0x55b   :  { %v842_v30 = vsel %vm841_vm1, %v1196_v19, %v838_v60 }
 0x55c   :  { %v852_v47 = vmul.f32 %v1191_v27, %v842_v30 }
 0x55e   :  { %v853_v35 = vperm.slane %v852_v47, 1 }
 0x560   :  { %v854_v16 = vmul.f32 %v853_v35, %v844_v31  ;;  %v855_v62 = vmul.f32 %v853_v35, %v845_v32  ;;  %v856_v40 = vmul.f32 %v853_v35, %v846_v33  ;;  %v857_v41 = vmul.f32 %v853_v35, %v847_v34 }
 0x562   :  { %v862_v42 = vadd.f32 %v1192_v36, %v854_v16  ;;  %v863_v43 = vadd.f32 %v1192_v36, %v855_v62  ;;  %v864_v44 = vadd.f32 %v1192_v36, %v856_v40  ;;  %v865_v46 = vadd.f32 %v1192_v36, %v857_v41 }
 0x564   :  { %v866_v38 = vadd.f32 %v862_v42, %v1368_v20  ;;  %v867_v37 = vadd.f32 %v863_v43, %v1370_v21  ;;  %v868_v39 = vadd.f32 %v864_v44, %v1374_v23  ;;  %v869_v48 = vadd.f32 %v865_v46, %v1372_v22 }
 0x566   :  { %v870_v49 = vmax.f32 %v866_v38, 0.0  ;;  %v871_v50 = vmax.f32 %v867_v37, 0.0  ;;  %v872_v51 = vmax.f32 %v868_v39, 0.0  ;;  %v873_v52 = vmax.f32 %v869_v48, 0.0 }
 0x568   :  { %874 = vst [vmem:[#allocation8] sm:$0xff] %v870_v49 }
 0x569   :  { %875 = vst [vmem:[#allocation8 + $0x8] sm:$0xff] %v871_v50 }
 0x56a   :  { %876 = vst [vmem:[#allocation8 + $0x10] sm:$0xff] %v872_v51 }
 0x56b   :  { %877 = vst [vmem:[#allocation8 + $0x18] sm:$0xff] %v873_v52 }
 0x56c   :  { %890 = dma.vmem_to_hbm [thread:$0]  %s883_s6, 512, %s885_s27, [#allocation4], %s1303_s13, %s1303_s13, %s1304_s1  }
 0x56d   :  { %1297 = dma.done.wait [#allocation4], 512  }
 0x56e   :  { %1298 = vsyncadd [#allocation4], 4294966784 }
 0x56f   :  { %895 = vsyncpa [#allocation3], 1 }
 0x570   :  { %896 = vsyncpa [#allocation6], 1 }
 0x571   :  { %897 = vsyncpa [#allocation4], 1 }

</bundles_post_ra>
